<compile_context>
chip_gen: v7x
topology: tpu7x:2x2x1
jax: 0.10.0
libtpu: 0.0.40
codegen_flags: <defaults>
</compile_context>

<pallas_src>
import jax
import jax.numpy as jnp
from jax.experimental import pallas as pl
from jax.experimental.pallas import tpu as pltpu

_LANE = 128       # lane / MXU granule
_SUBLANE = 8      # sublane granule
_DEFAULT_BATCH_BLOCK = 512


def _round_up(x, m):
    return ((x + m - 1) // m) * m


def _pad_to(a, shape):
    pads = [(0, t - s) for s, t in zip(a.shape, shape)]
    if all(p == (0, 0) for p in pads):
        return a
    return jnp.pad(a, pads)


def _vmem_limit_bytes(default_cap=64 * 1024 * 1024):
    """~7/8 of physical VMEM (112 MiB on v5e/v6e, 56 MiB on v7x)."""
    try:
        cap = int(getattr(pltpu.get_tpu_info(), "vmem_capacity_bytes", default_cap))
    except Exception:
        cap = default_cap
    return (cap * 7) // 8


def _vmem_budget_bytes():
    """Planning budget: scoped limit minus ~4 MiB Mosaic internal scratch,
    times a 0.9 safety factor."""
    return int(max(_vmem_limit_bytes() - 4 * 1024 * 1024, 8 * 1024 * 1024) * 0.9)


def _vmem_estimate_bytes(tb, th, d_in, d_out, x_item, p_item, o_item):
    """Conservative VMEM footprint for one pipeline stage (all three heads):
    double-buffered x/params/out + f32 accumulator + f32 matmul temporaries."""
    tb8 = _round_up(max(tb, 1), _SUBLANE)
    d_in_l = _round_up(d_in, _LANE)
    d_out_l = _round_up(d_out, _LANE)
    x_b = 2 * 3 * tb8 * d_in_l * x_item
    w1_b = 2 * 3 * _round_up(d_in, _SUBLANE) * th * p_item
    b1_b = 2 * 3 * _SUBLANE * th * p_item
    w2_b = 2 * 3 * th * d_out_l * p_item
    b2_b = 2 * 3 * _SUBLANE * d_out_l * p_item
    o_b = 2 * 3 * tb8 * d_out_l * o_item
    acc_b = 3 * tb8 * d_out_l * 4
    tmp_b = 2 * tb8 * th * 4 + tb8 * d_out_l * 4
    return x_b + w1_b + b1_b + w2_b + b2_b + o_b + acc_b + tmp_b


def _choose_tiles(batch, d_in, d_hid, d_out, x_item, p_item, o_item,
                  requested_tb, budget):
    """Pick (batch_tile, hidden_tile).  The hidden tile always divides the
    (128-padded) hidden width exactly — partial blocks along a contraction
    dim would contaminate the accumulator, zero padding is exact instead."""
    if batch <= requested_tb:
        tb = batch                                        # full-dim block
    else:
        tb = max(_SUBLANE, (requested_tb // _SUBLANE) * _SUBLANE)
    n_lanes = d_hid // _LANE
    th_cands = [d * _LANE for d in range(n_lanes, 0, -1) if n_lanes % d == 0]
    while True:
        for th in th_cands:
            if _vmem_estimate_bytes(tb, th, d_in, d_out,
                                    x_item, p_item, o_item) <= budget:
                return tb, th
        if tb <= _SUBLANE:
            return tb, th_cands[-1]                       # best effort
        tb = max(_SUBLANE, (tb // 2 // _SUBLANE) * _SUBLANE)


def _proj3_kernel(xs_ref, xc_ref, xv_ref, w1_ref, b1_ref, w2_ref, b2_ref,
                  os_ref, oc_ref, ov_ref, acc_ref):
    """One (batch_tile, hidden_tile) grid cell: partial Linear->ReLU->Linear
    for all three heads, accumulated over hidden tiles in f32 scratch."""
    j = pl.program_id(1)

    @pl.when(j == 0)
    def _():
        acc_ref[...] = jnp.zeros_like(acc_ref)

    x_refs = (xs_ref, xc_ref, xv_ref)
    o_refs = (os_ref, oc_ref, ov_ref)
    p_dtype = w1_ref.dtype

    for h in range(3):
        x = x_refs[h][...]
        if x.dtype != p_dtype:
            x = x.astype(p_dtype)
        hid = jnp.dot(x, w1_ref[h], preferred_element_type=jnp.float32)
        hid = jnp.maximum(hid + b1_ref[h].astype(jnp.float32), 0.0)
        acc_ref[h] = acc_ref[h] + jnp.dot(hid.astype(p_dtype), w2_ref[h],
                                          preferred_element_type=jnp.float32)

    @pl.when(j == pl.num_programs(1) - 1)
    def _():
        for h in range(3):
            o_refs[h][...] = (acc_ref[h] + b2_ref[h].astype(jnp.float32)
                              ).astype(o_refs[h].dtype)


def proj3_forward(signals, cwts, videos, w1, b1, w2, b2,
                  batch_block=_DEFAULT_BATCH_BLOCK):
    """Fused forward of the three projection heads.

    signals/cwts/videos: (B, D_in) — three separate inputs, no stacking.
    w1: (3, D_in, D_h), b1: (3, 1, D_h), w2: (3, D_h, D_out), b2: (3, 1, D_out)
    (D_h = D_in rounded up to 128; padding is exact zeros).
    Returns three (B, D_out) arrays."""
    assert signals.shape == cwts.shape == videos.shape
    batch, d_in = signals.shape
    d_hid = w1.shape[-1]
    d_out = w2.shape[-1]
    x_item = signals.dtype.itemsize
    p_item = w1.dtype.itemsize
    out_dtype = signals.dtype
    o_item = out_dtype.itemsize

    tb, th = _choose_tiles(batch, d_in, d_hid, d_out, x_item, p_item, o_item,
                           batch_block, _vmem_budget_bytes())
    grid = (pl.cdiv(batch, tb), d_hid // th)

    x_spec = pl.BlockSpec((tb, d_in), lambda i, j: (i, 0))
    o_spec = pl.BlockSpec((tb, d_out), lambda i, j: (i, 0))
    in_specs = [
        x_spec, x_spec, x_spec,
        pl.BlockSpec((3, d_in, th), lambda i, j: (0, 0, j)),    # W1 (hidden cols)
        pl.BlockSpec((3, 1, th), lambda i, j: (0, 0, j)),       # b1 (hidden cols)
        pl.BlockSpec((3, th, d_out), lambda i, j: (0, j, 0)),   # W2 (hidden rows)
        pl.BlockSpec((3, 1, d_out), lambda i, j: (0, 0, 0)),    # b2 (resident)
    ]
    out_specs = [o_spec, o_spec, o_spec]
    out_shape = [jax.ShapeDtypeStruct((batch, d_out), out_dtype) for _ in range(3)]

    flops = 2 * 3 * batch * (d_in * d_hid + d_hid * d_out)
    bytes_accessed = (3 * batch * (d_in * x_item + d_out * o_item)
                      + 3 * (d_in * d_hid + d_hid * d_out + d_hid + d_out) * p_item)
    cost = pl.CostEstimate(flops=flops, transcendentals=0,
                           bytes_accessed=bytes_accessed)

    call = pl.pallas_call(
        _proj3_kernel,
        out_shape=out_shape,
        grid_spec=pltpu.PrefetchScalarGridSpec(
            num_scalar_prefetch=0,
            grid=grid,
            in_specs=in_specs,
            out_specs=out_specs,
            scratch_shapes=[pltpu.VMEM((3, tb, d_out), jnp.float32)],
        ),
        compiler_params=pltpu.CompilerParams(
            dimension_semantics=("parallel", "arbitrary"),
            vmem_limit_bytes=_vmem_limit_bytes(),
        ),
        cost_estimate=cost,
    )
    return tuple(call(signals, cwts, videos, w1, b1, w2, b2))


def init_head_params(key, in_dim, out_dim, dtype=jnp.float32):
    """PyTorch nn.Linear-style init U(-1/sqrt(fan_in), 1/sqrt(fan_in)),
    weights stored (in, out)."""
    k1, k2, k3, k4 = jax.random.split(key, 4)
    lim = 1.0 / (in_dim ** 0.5)
    w1 = jax.random.uniform(k1, (in_dim, in_dim), dtype, -lim, lim)
    b1 = jax.random.uniform(k2, (1, in_dim), dtype, -lim, lim)
    w2 = jax.random.uniform(k3, (in_dim, out_dim), dtype, -lim, lim)
    b2 = jax.random.uniform(k4, (1, out_dim), dtype, -lim, lim)
    return (w1, b1, w2, b2)


class ProjPallas:
    """JAX/Pallas equivalent of the PyTorch `Proj` module: three independent
    Linear->ReLU->Linear projection heads fused into one pallas_call."""

    def __init__(self, in_feature_dim, out_feature_dim, key,
                 dtype=jnp.float32, param_dtype=None,
                 batch_block=_DEFAULT_BATCH_BLOCK):
        self.in_dim = in_feature_dim
        self.out_dim = out_feature_dim
        self.batch_block = batch_block
        param_dtype = dtype if param_dtype is None else param_dtype
        # Hidden width padded to the 128-lane granule once at init.  Padding
        # is exact: zero W1 columns / zero b1 / zero W2 rows contribute 0.
        self.d_hid = _round_up(in_feature_dim, _LANE)

        keys = jax.random.split(key, 3)
        # order: signals, CWTs, videos — matches the PyTorch module's heads.
        self.unpadded_params = [
            init_head_params(k, in_feature_dim, out_feature_dim, dtype)
            for k in keys
        ]
        self.w1 = jnp.stack([_pad_to(p[0], (in_feature_dim, self.d_hid))
                             for p in self.unpadded_params]).astype(param_dtype)
        self.b1 = jnp.stack([_pad_to(p[1], (1, self.d_hid))
                             for p in self.unpadded_params]).astype(param_dtype)
        self.w2 = jnp.stack([_pad_to(p[2], (self.d_hid, out_feature_dim))
                             for p in self.unpadded_params]).astype(param_dtype)
        self.b2 = jnp.stack([p[3] for p in self.unpadded_params]).astype(param_dtype)

    def __call__(self, signals_feature, cwts_feature, videos_feature):
        return proj3_forward(signals_feature, cwts_feature, videos_feature,
                             self.w1, self.b1, self.w2, self.b2,
                             batch_block=self.batch_block)


def _reference_head(x, w1, b1, w2, b2):
    h = jnp.maximum(x @ w1 + b1, 0.0)
    return h @ w2 + b2


if __name__ == "__main__":
    # Small shapes consistent with the module's forward:
    # three (batch, in_feature_dim) feature tensors.
    BATCH, IN_DIM, OUT_DIM = 8, 32, 16

    key = jax.random.PRNGKey(0)
    k_params, k_s, k_c, k_v = jax.random.split(key, 4)

    proj = ProjPallas(IN_DIM, OUT_DIM, k_params)

    signals = jax.random.normal(k_s, (BATCH, IN_DIM), jnp.float32)
    cwts = jax.random.normal(k_c, (BATCH, IN_DIM), jnp.float32)
    videos = jax.random.normal(k_v, (BATCH, IN_DIM), jnp.float32)

    out_s, out_c, out_v = proj(signals, cwts, videos)
    jax.block_until_ready((out_s, out_c, out_v))

    # Sanity check against a pure-JAX reference (unpadded params).
    ref_s = _reference_head(signals, *proj.unpadded_params[0])
    ref_c = _reference_head(cwts, *proj.unpadded_params[1])
    ref_v = _reference_head(videos, *proj.unpadded_params[2])
    assert out_s.shape == (BATCH, OUT_DIM)
    assert out_c.shape == (BATCH, OUT_DIM)
    assert out_v.shape == (BATCH, OUT_DIM)
    assert jnp.allclose(out_s, ref_s, atol=1e-4, rtol=1e-4)
    assert jnp.allclose(out_c, ref_c, atol=1e-4, rtol=1e-4)
    assert jnp.allclose(out_v, ref_v, atol=1e-4, rtol=1e-4)

    print("KERNEL_OK")
</pallas_src>

<mosaic_0001>
module attributes {stable_mosaic.version = 11 : i64} {
  func.func @_proj3_kernel(%arg0: i32, %arg1: i32, %arg2: memref<8x32xf32, #tpu.memory_space<vmem>>, %arg3: memref<8x32xf32, #tpu.memory_space<vmem>>, %arg4: memref<8x32xf32, #tpu.memory_space<vmem>>, %arg5: memref<3x32x128xf32, #tpu.memory_space<vmem>>, %arg6: memref<3x1x128xf32, #tpu.memory_space<vmem>>, %arg7: memref<3x128x16xf32, #tpu.memory_space<vmem>>, %arg8: memref<3x1x16xf32, #tpu.memory_space<vmem>>, %arg9: memref<8x16xf32, #tpu.memory_space<vmem>>, %arg10: memref<8x16xf32, #tpu.memory_space<vmem>>, %arg11: memref<8x16xf32, #tpu.memory_space<vmem>>, %arg12: memref<3x8x16xf32, #tpu.memory_space<vmem>>) attributes {dimension_semantics = [#tpu.dimension_semantics<parallel>, #tpu.dimension_semantics<arbitrary>], iteration_bounds = array<i64: 1, 1>, scalar_prefetch = 0 : i64, scratch_operands = 1 : i64, tpu.core_type = #tpu.core_type<tc>, window_params = [{transform_indices = @transform_0, window_bounds = array<i64: 8, 32>}, {transform_indices = @transform_1, window_bounds = array<i64: 8, 32>}, {transform_indices = @transform_2, window_bounds = array<i64: 8, 32>}, {transform_indices = @transform_3, window_bounds = array<i64: 3, 32, 128>}, {transform_indices = @transform_4, window_bounds = array<i64: 3, 1, 128>}, {transform_indices = @transform_5, window_bounds = array<i64: 3, 128, 16>}, {pipeline_mode = #tpu.pipeline_mode<synchronous>, transform_indices = @transform_6, window_bounds = array<i64: 3, 1, 16>}, {transform_indices = @transform_7, window_bounds = array<i64: 8, 16>}, {transform_indices = @transform_8, window_bounds = array<i64: 8, 16>}, {transform_indices = @transform_9, window_bounds = array<i64: 8, 16>}]} {
    %c0_i32 = arith.constant 0 : i32
    %0 = arith.cmpi eq, %arg1, %c0_i32 : i32
    %1 = arith.extui %0 : i1 to i32
    %c0_i32_0 = arith.constant 0 : i32
    %2 = arith.cmpi ne, %1, %c0_i32_0 : i32
    scf.if %2 {
      %cst_59 = arith.constant 0.000000e+00 : f32
      %63 = vector.broadcast %cst_59 : f32 to vector<3x8x16xf32>
      %c0_60 = arith.constant 0 : index
      %c0_61 = arith.constant 0 : index
      %c0_62 = arith.constant 0 : index
      %64 = vector.load %arg12[%c0_60, %c0_61, %c0_62] : memref<3x8x16xf32, #tpu.memory_space<vmem>>, vector<3x8x16xf32>
      tpu.vector_store %arg12[%c0_60, %c0_61, %c0_62], %63 {strides = array<i32>} : memref<3x8x16xf32, #tpu.memory_space<vmem>>, vector<3x8x16xf32>,
    } else {
    }
    %c0 = arith.constant 0 : index
    %c0_1 = arith.constant 0 : index
    %3 = vector.load %arg2[%c0, %c0_1] : memref<8x32xf32, #tpu.memory_space<vmem>>, vector<8x32xf32>
    %c0_2 = arith.constant 0 : index
    %c0_3 = arith.constant 0 : index
    %c0_4 = arith.constant 0 : index
    %4 = vector.load %arg5[%c0_2, %c0_3, %c0_4] : memref<3x32x128xf32, #tpu.memory_space<vmem>>, vector<1x32x128xf32>
    %5 = vector.shape_cast %4 : vector<1x32x128xf32> to vector<32x128xf32>
    %cst = arith.constant dense<0.000000e+00> : vector<8x128xf32>
    %6 = tpu.matmul %3, %5, %cst {dimension_numbers = #tpu.dot_dimension_numbers<[1], [0], [0], [1], [0, 0, 1, 1], [], []>} : vector<8x32xf32>, vector<32x128xf32>, vector<8x128xf32> -> vector<8x128xf32>
    %c0_5 = arith.constant 0 : index
    %c0_6 = arith.constant 0 : index
    %c0_7 = arith.constant 0 : index
    %7 = vector.load %arg6[%c0_5, %c0_6, %c0_7] : memref<3x1x128xf32, #tpu.memory_space<vmem>>, vector<1x1x128xf32>
    %8 = vector.shape_cast %7 : vector<1x1x128xf32> to vector<1x128xf32>
    %9 = vector.broadcast %8 : vector<1x128xf32> to vector<8x128xf32>
    %10 = arith.addf %6, %9 : vector<8x128xf32>
    %cst_8 = arith.constant 0.000000e+00 : f32
    %11 = vector.broadcast %cst_8 : f32 to vector<8x128xf32>
    %12 = arith.maximumf %10, %11 : vector<8x128xf32>
    %c0_9 = arith.constant 0 : index
    %c0_10 = arith.constant 0 : index
    %c0_11 = arith.constant 0 : index
    %13 = vector.load %arg12[%c0_9, %c0_10, %c0_11] : memref<3x8x16xf32, #tpu.memory_space<vmem>>, vector<1x8x16xf32>
    %14 = vector.shape_cast %13 : vector<1x8x16xf32> to vector<8x16xf32>
    %c0_12 = arith.constant 0 : index
    %c0_13 = arith.constant 0 : index
    %c0_14 = arith.constant 0 : index
    %15 = vector.load %arg7[%c0_12, %c0_13, %c0_14] : memref<3x128x16xf32, #tpu.memory_space<vmem>>, vector<1x128x16xf32>
    %16 = vector.shape_cast %15 : vector<1x128x16xf32> to vector<128x16xf32>
    %cst_15 = arith.constant dense<0.000000e+00> : vector<8x16xf32>
    %17 = tpu.matmul %12, %16, %cst_15 {dimension_numbers = #tpu.dot_dimension_numbers<[1], [0], [0], [1], [0, 0, 1, 1], [], []>} : vector<8x128xf32>, vector<128x16xf32>, vector<8x16xf32> -> vector<8x16xf32>
    %18 = arith.addf %14, %17 : vector<8x16xf32>
    %c0_16 = arith.constant 0 : index
    %c0_17 = arith.constant 0 : index
    %c0_18 = arith.constant 0 : index
    %19 = vector.load %arg12[%c0_16, %c0_17, %c0_18] : memref<3x8x16xf32, #tpu.memory_space<vmem>>, vector<1x8x16xf32>
    %20 = vector.shape_cast %19 : vector<1x8x16xf32> to vector<8x16xf32>
    %21 = vector.shape_cast %18 : vector<8x16xf32> to vector<1x8x16xf32>
    tpu.vector_store %arg12[%c0_16, %c0_17, %c0_18], %21 {strides = array<i32>} : memref<3x8x16xf32, #tpu.memory_space<vmem>>, vector<1x8x16xf32>,
    %c0_19 = arith.constant 0 : index
    %c0_20 = arith.constant 0 : index
    %22 = vector.load %arg3[%c0_19, %c0_20] : memref<8x32xf32, #tpu.memory_space<vmem>>, vector<8x32xf32>
    %c1 = arith.constant 1 : index
    %c0_21 = arith.constant 0 : index
    %c0_22 = arith.constant 0 : index
    %23 = vector.load %arg5[%c1, %c0_21, %c0_22] : memref<3x32x128xf32, #tpu.memory_space<vmem>>, vector<1x32x128xf32>
    %24 = vector.shape_cast %23 : vector<1x32x128xf32> to vector<32x128xf32>
    %cst_23 = arith.constant dense<0.000000e+00> : vector<8x128xf32>
    %25 = tpu.matmul %22, %24, %cst_23 {dimension_numbers = #tpu.dot_dimension_numbers<[1], [0], [0], [1], [0, 0, 1, 1], [], []>} : vector<8x32xf32>, vector<32x128xf32>, vector<8x128xf32> -> vector<8x128xf32>
    %c1_24 = arith.constant 1 : index
    %c0_25 = arith.constant 0 : index
    %c0_26 = arith.constant 0 : index
    %26 = vector.load %arg6[%c1_24, %c0_25, %c0_26] : memref<3x1x128xf32, #tpu.memory_space<vmem>>, vector<1x1x128xf32>
    %27 = vector.shape_cast %26 : vector<1x1x128xf32> to vector<1x128xf32>
    %28 = vector.broadcast %27 : vector<1x128xf32> to vector<8x128xf32>
    %29 = arith.addf %25, %28 : vector<8x128xf32>
    %cst_27 = arith.constant 0.000000e+00 : f32
    %30 = vector.broadcast %cst_27 : f32 to vector<8x128xf32>
    %31 = arith.maximumf %29, %30 : vector<8x128xf32>
    %c1_28 = arith.constant 1 : index
    %c0_29 = arith.constant 0 : index
    %c0_30 = arith.constant 0 : index
    %32 = vector.load %arg12[%c1_28, %c0_29, %c0_30] : memref<3x8x16xf32, #tpu.memory_space<vmem>>, vector<1x8x16xf32>
    %33 = vector.shape_cast %32 : vector<1x8x16xf32> to vector<8x16xf32>
    %c1_31 = arith.constant 1 : index
    %c0_32 = arith.constant 0 : index
    %c0_33 = arith.constant 0 : index
    %34 = vector.load %arg7[%c1_31, %c0_32, %c0_33] : memref<3x128x16xf32, #tpu.memory_space<vmem>>, vector<1x128x16xf32>
    %35 = vector.shape_cast %34 : vector<1x128x16xf32> to vector<128x16xf32>
    %cst_34 = arith.constant dense<0.000000e+00> : vector<8x16xf32>
    %36 = tpu.matmul %31, %35, %cst_34 {dimension_numbers = #tpu.dot_dimension_numbers<[1], [0], [0], [1], [0, 0, 1, 1], [], []>} : vector<8x128xf32>, vector<128x16xf32>, vector<8x16xf32> -> vector<8x16xf32>
    %37 = arith.addf %33, %36 : vector<8x16xf32>
    %c1_35 = arith.constant 1 : index
    %c0_36 = arith.constant 0 : index
    %c0_37 = arith.constant 0 : index
    %38 = vector.load %arg12[%c1_35, %c0_36, %c0_37] : memref<3x8x16xf32, #tpu.memory_space<vmem>>, vector<1x8x16xf32>
    %39 = vector.shape_cast %38 : vector<1x8x16xf32> to vector<8x16xf32>
    %40 = vector.shape_cast %37 : vector<8x16xf32> to vector<1x8x16xf32>
    tpu.vector_store %arg12[%c1_35, %c0_36, %c0_37], %40 {strides = array<i32>} : memref<3x8x16xf32, #tpu.memory_space<vmem>>, vector<1x8x16xf32>,
    %c0_38 = arith.constant 0 : index
    %c0_39 = arith.constant 0 : index
    %41 = vector.load %arg4[%c0_38, %c0_39] : memref<8x32xf32, #tpu.memory_space<vmem>>, vector<8x32xf32>
    %c2 = arith.constant 2 : index
    %c0_40 = arith.constant 0 : index
    %c0_41 = arith.constant 0 : index
    %42 = vector.load %arg5[%c2, %c0_40, %c0_41] : memref<3x32x128xf32, #tpu.memory_space<vmem>>, vector<1x32x128xf32>
    %43 = vector.shape_cast %42 : vector<1x32x128xf32> to vector<32x128xf32>
    %cst_42 = arith.constant dense<0.000000e+00> : vector<8x128xf32>
    %44 = tpu.matmul %41, %43, %cst_42 {dimension_numbers = #tpu.dot_dimension_numbers<[1], [0], [0], [1], [0, 0, 1, 1], [], []>} : vector<8x32xf32>, vector<32x128xf32>, vector<8x128xf32> -> vector<8x128xf32>
    %c2_43 = arith.constant 2 : index
    %c0_44 = arith.constant 0 : index
    %c0_45 = arith.constant 0 : index
    %45 = vector.load %arg6[%c2_43, %c0_44, %c0_45] : memref<3x1x128xf32, #tpu.memory_space<vmem>>, vector<1x1x128xf32>
    %46 = vector.shape_cast %45 : vector<1x1x128xf32> to vector<1x128xf32>
    %47 = vector.broadcast %46 : vector<1x128xf32> to vector<8x128xf32>
    %48 = arith.addf %44, %47 : vector<8x128xf32>
    %cst_46 = arith.constant 0.000000e+00 : f32
    %49 = vector.broadcast %cst_46 : f32 to vector<8x128xf32>
    %50 = arith.maximumf %48, %49 : vector<8x128xf32>
    %c2_47 = arith.constant 2 : index
    %c0_48 = arith.constant 0 : index
    %c0_49 = arith.constant 0 : index
    %51 = vector.load %arg12[%c2_47, %c0_48, %c0_49] : memref<3x8x16xf32, #tpu.memory_space<vmem>>, vector<1x8x16xf32>
    %52 = vector.shape_cast %51 : vector<1x8x16xf32> to vector<8x16xf32>
    %c2_50 = arith.constant 2 : index
    %c0_51 = arith.constant 0 : index
    %c0_52 = arith.constant 0 : index
    %53 = vector.load %arg7[%c2_50, %c0_51, %c0_52] : memref<3x128x16xf32, #tpu.memory_space<vmem>>, vector<1x128x16xf32>
    %54 = vector.shape_cast %53 : vector<1x128x16xf32> to vector<128x16xf32>
    %cst_53 = arith.constant dense<0.000000e+00> : vector<8x16xf32>
    %55 = tpu.matmul %50, %54, %cst_53 {dimension_numbers = #tpu.dot_dimension_numbers<[1], [0], [0], [1], [0, 0, 1, 1], [], []>} : vector<8x128xf32>, vector<128x16xf32>, vector<8x16xf32> -> vector<8x16xf32>
    %56 = arith.addf %52, %55 : vector<8x16xf32>
    %c2_54 = arith.constant 2 : index
    %c0_55 = arith.constant 0 : index
    %c0_56 = arith.constant 0 : index
    %57 = vector.load %arg12[%c2_54, %c0_55, %c0_56] : memref<3x8x16xf32, #tpu.memory_space<vmem>>, vector<1x8x16xf32>
    %58 = vector.shape_cast %57 : vector<1x8x16xf32> to vector<8x16xf32>
    %59 = vector.shape_cast %56 : vector<8x16xf32> to vector<1x8x16xf32>
    tpu.vector_store %arg12[%c2_54, %c0_55, %c0_56], %59 {strides = array<i32>} : memref<3x8x16xf32, #tpu.memory_space<vmem>>, vector<1x8x16xf32>,
    %c0_i32_57 = arith.constant 0 : i32
    %60 = arith.cmpi eq, %arg1, %c0_i32_57 : i32
    %61 = arith.extui %60 : i1 to i32
    %c0_i32_58 = arith.constant 0 : i32
    %62 = arith.cmpi ne, %61, %c0_i32_58 : i32
    scf.if %62 {
      %c0_59 = arith.constant 0 : index
      %c0_60 = arith.constant 0 : index
      %c0_61 = arith.constant 0 : index
      %63 = vector.load %arg12[%c0_59, %c0_60, %c0_61] : memref<3x8x16xf32, #tpu.memory_space<vmem>>, vector<1x8x16xf32>
      %64 = vector.shape_cast %63 : vector<1x8x16xf32> to vector<8x16xf32>
      %c0_62 = arith.constant 0 : index
      %c0_63 = arith.constant 0 : index
      %c0_64 = arith.constant 0 : index
      %65 = vector.load %arg8[%c0_62, %c0_63, %c0_64] : memref<3x1x16xf32, #tpu.memory_space<vmem>>, vector<1x1x16xf32>
      %66 = vector.shape_cast %65 : vector<1x1x16xf32> to vector<1x16xf32>
      %67 = vector.broadcast %66 : vector<1x16xf32> to vector<8x16xf32>
      %68 = arith.addf %64, %67 : vector<8x16xf32>
      %c0_65 = arith.constant 0 : index
      %c0_66 = arith.constant 0 : index
      %69 = vector.load %arg9[%c0_65, %c0_66] : memref<8x16xf32, #tpu.memory_space<vmem>>, vector<8x16xf32>
      tpu.vector_store %arg9[%c0_65, %c0_66], %68 {strides = array<i32>} : memref<8x16xf32, #tpu.memory_space<vmem>>, vector<8x16xf32>,
      %c1_67 = arith.constant 1 : index
      %c0_68 = arith.constant 0 : index
      %c0_69 = arith.constant 0 : index
      %70 = vector.load %arg12[%c1_67, %c0_68, %c0_69] : memref<3x8x16xf32, #tpu.memory_space<vmem>>, vector<1x8x16xf32>
      %71 = vector.shape_cast %70 : vector<1x8x16xf32> to vector<8x16xf32>
      %c1_70 = arith.constant 1 : index
      %c0_71 = arith.constant 0 : index
      %c0_72 = arith.constant 0 : index
      %72 = vector.load %arg8[%c1_70, %c0_71, %c0_72] : memref<3x1x16xf32, #tpu.memory_space<vmem>>, vector<1x1x16xf32>
      %73 = vector.shape_cast %72 : vector<1x1x16xf32> to vector<1x16xf32>
      %74 = vector.broadcast %73 : vector<1x16xf32> to vector<8x16xf32>
      %75 = arith.addf %71, %74 : vector<8x16xf32>
      %c0_73 = arith.constant 0 : index
      %c0_74 = arith.constant 0 : index
      %76 = vector.load %arg10[%c0_73, %c0_74] : memref<8x16xf32, #tpu.memory_space<vmem>>, vector<8x16xf32>
      tpu.vector_store %arg10[%c0_73, %c0_74], %75 {strides = array<i32>} : memref<8x16xf32, #tpu.memory_space<vmem>>, vector<8x16xf32>,
      %c2_75 = arith.constant 2 : index
      %c0_76 = arith.constant 0 : index
      %c0_77 = arith.constant 0 : index
      %77 = vector.load %arg12[%c2_75, %c0_76, %c0_77] : memref<3x8x16xf32, #tpu.memory_space<vmem>>, vector<1x8x16xf32>
      %78 = vector.shape_cast %77 : vector<1x8x16xf32> to vector<8x16xf32>
      %c2_78 = arith.constant 2 : index
      %c0_79 = arith.constant 0 : index
      %c0_80 = arith.constant 0 : index
      %79 = vector.load %arg8[%c2_78, %c0_79, %c0_80] : memref<3x1x16xf32, #tpu.memory_space<vmem>>, vector<1x1x16xf32>
      %80 = vector.shape_cast %79 : vector<1x1x16xf32> to vector<1x16xf32>
      %81 = vector.broadcast %80 : vector<1x16xf32> to vector<8x16xf32>
      %82 = arith.addf %78, %81 : vector<8x16xf32>
      %c0_81 = arith.constant 0 : index
      %c0_82 = arith.constant 0 : index
      %83 = vector.load %arg11[%c0_81, %c0_82] : memref<8x16xf32, #tpu.memory_space<vmem>>, vector<8x16xf32>
      tpu.vector_store %arg11[%c0_81, %c0_82], %82 {strides = array<i32>} : memref<8x16xf32, #tpu.memory_space<vmem>>, vector<8x16xf32>,
    } else {
    }
    return
  }
  func.func @transform_0(%arg0: i32, %arg1: i32) -> (i32, i32) {
    %c0_i32 = arith.constant 0 : i32
    %c0_i32_0 = arith.constant 0 : i32
    return %arg0, %c0_i32 : i32, i32
  }
  func.func @transform_1(%arg0: i32, %arg1: i32) -> (i32, i32) {
    %c0_i32 = arith.constant 0 : i32
    %c0_i32_0 = arith.constant 0 : i32
    return %arg0, %c0_i32 : i32, i32
  }
  func.func @transform_2(%arg0: i32, %arg1: i32) -> (i32, i32) {
    %c0_i32 = arith.constant 0 : i32
    %c0_i32_0 = arith.constant 0 : i32
    return %arg0, %c0_i32 : i32, i32
  }
  func.func @transform_3(%arg0: i32, %arg1: i32) -> (i32, i32, i32) {
    %c0_i32 = arith.constant 0 : i32
    %c0_i32_0 = arith.constant 0 : i32
    %c0_i32_1 = arith.constant 0 : i32
    return %c0_i32, %c0_i32_0, %arg1 : i32, i32, i32
  }
  func.func @transform_4(%arg0: i32, %arg1: i32) -> (i32, i32, i32) {
    %c0_i32 = arith.constant 0 : i32
    %c0_i32_0 = arith.constant 0 : i32
    %c0_i32_1 = arith.constant 0 : i32
    return %c0_i32, %c0_i32_0, %arg1 : i32, i32, i32
  }
  func.func @transform_5(%arg0: i32, %arg1: i32) -> (i32, i32, i32) {
    %c0_i32 = arith.constant 0 : i32
    %c0_i32_0 = arith.constant 0 : i32
    %c0_i32_1 = arith.constant 0 : i32
    return %c0_i32, %arg1, %c0_i32_0 : i32, i32, i32
  }
  func.func @transform_6(%arg0: i32, %arg1: i32) -> (i32, i32, i32) {
    %c0_i32 = arith.constant 0 : i32
    %c0_i32_0 = arith.constant 0 : i32
    %c0_i32_1 = arith.constant 0 : i32
    %c0_i32_2 = arith.constant 0 : i32
    return %c0_i32, %c0_i32_0, %c0_i32_1 : i32, i32, i32
  }
  func.func @transform_7(%arg0: i32, %arg1: i32) -> (i32, i32) {
    %c0_i32 = arith.constant 0 : i32
    %c0_i32_0 = arith.constant 0 : i32
    return %arg0, %c0_i32 : i32, i32
  }
  func.func @transform_8(%arg0: i32, %arg1: i32) -> (i32, i32) {
    %c0_i32 = arith.constant 0 : i32
    %c0_i32_0 = arith.constant 0 : i32
    return %arg0, %c0_i32 : i32, i32
  }
  func.func @transform_9(%arg0: i32, %arg1: i32) -> (i32, i32) {
    %c0_i32 = arith.constant 0 : i32
    %c0_i32_0 = arith.constant 0 : i32
    return %arg0, %c0_i32 : i32, i32
  }
}

</mosaic_0001>

<bundles_post_ra>
// kernel: tpu_custom_call.1
= control target key start
LH: loop header
LB: loop body
LE: loop exit
PB: predicated region body
PF: predicated region fallthrough
CT: control target
= control target key end

     0   :  { %15 = vsyncpa [#allocation4], 0  ;;  %v1073_v3 = vmov 0.0|0.0   ;;  %vm1074_vm0 = vmmov 0   ;;  %v1075_v6 = vmov 0.0   ;;  %vm51_vm1 = vcmask 261120   ;;  %s1429_s0 = inlined_call_operand.vmem [shape: f32[8,32], index: 0, kind: input, shape index: {}]   ;;  %s1430_s1 = inlined_call_operand.vmem [shape: f32[8,32], index: 1, kind: input, shape index: {}]   ;;  %s1431_s2 = inlined_call_operand.vmem [shape: f32[8,32], index: 2, kind: input, shape index: {}]   ;;  %s1432_s3 = inlined_call_operand.vmem [shape: f32[3,32,128], index: 3, kind: input, shape index: {}]   ;;  %s1433_s4 = inlined_call_operand.vmem [shape: f32[3,1,128], index: 4, kind: input, shape index: {}]   ;;  %s1434_s5 = inlined_call_operand.vmem [shape: f32[3,128,16], index: 5, kind: input, shape index: {}]   ;;  %s1435_s6 = inlined_call_operand.vmem [shape: f32[3,1,16], index: 6, kind: input, shape index: {}]   ;;  %s1436_s7 = inlined_call_operand.hbm [shape: f32[8,16], index: 7, kind: output, shape index: {0}]   ;;  %s1437_s8 = inlined_call_operand.hbm [shape: f32[8,16], index: 8, kind: output, shape index: {1}]   ;;  %s1438_s9 = inlined_call_operand.hbm [shape: f32[8,16], index: 9, kind: output, shape index: {2}]  }
   0x1   :  { %v40_v0 = vld [vmem:[%s1432_s3] sm:$0xff]  ;;  %v41_v1 = vld [vmem:[%s1432_s3 + $0x8] sm:$0xff]  ;;  %v42_v2 = vld [vmem:[%s1432_s3 + $0x10] sm:$0xff]  ;;  %907 = vmatprep.subr.bf16.mxu0 %v1073_v3  ;;  %777 = vmatprep.mubr.msk.f32.mxu0 %vm1074_vm0, %v1075_v6 }
   0x2   :  { %v908_v4 = vpack.c.bf16 %v41_v1, %v40_v0  ;;  %v43_v5 = vld [vmem:[%s1432_s3 + $0x18] sm:$0xff]  ;;  %913 = vmatprep.subr.bf16.mxu1 %v1073_v3  ;;  %812 = vmatprep.mubr.msk.f32.mxu1 %vm1074_vm0, %v1075_v6  ;;  %v652_v8 = vld [vmem:[%s1432_s3 + $0x20] sm:$0xff]  ;;  %v128_v10 = vld [vmem:[%s1434_s5 + $0x8] sm:$0xff] }
   0x3   :  { %v911_v7 = vpack.c.bf16 %v43_v5, %v42_v2  ;;  %v127_v9 = vld [vmem:[%s1434_s5] sm:$0xff]  ;;  %v653_v11 = vld [vmem:[%s1432_s3 + $0x28] sm:$0xff]  ;;  %v129_v13 = vld [vmem:[%s1434_s5 + $0x10] sm:$0xff] }
   0x4   :  { %909 = vmatpush3.bf16.msra.mxu0 %v908_v4  ;;  %v914_v12 = vpack.c.bf16 %v128_v10, %v127_v9  ;;  %v130_v14 = vld [vmem:[%s1434_s5 + $0x18] sm:$0xff]  ;;  %v39_v16 = vld [vmem:[%s1429_s0] sm:$0xff]  ;;  %v938_v17 = vpack.c.bf16 %v653_v11, %v652_v8  ;;  %v132_v19 = vld [vmem:[%s1434_s5 + $0x28] sm:$0xff] }
   0x5   :  { %910 = vmatprep.subr.bf16.mxu0 %v1073_v3  ;;  %v917_v15 = vpack.c.bf16 %v130_v14, %v129_v13  ;;  %v131_v18 = vld [vmem:[%s1434_s5 + $0x20] sm:$0xff]  ;;  %v654_v20 = vld [vmem:[%s1432_s3 + $0x30] sm:$0xff]  ;;  %v655_v21 = vld [vmem:[%s1432_s3 + $0x38] sm:$0xff] }
   0x6   :  { %915 = vmatpush3.bf16.msra.mxu1 %v914_v12  ;;  %v920_v22 = vpack.c.bf16 %v132_v19, %v131_v18  ;;  %v941_v23 = vpack.c.bf16 %v655_v21, %v654_v20  ;;  %v133_v24 = vld [vmem:[%s1434_s5 + $0x30] sm:$0xff]  ;;  %v134_v25 = vld [vmem:[%s1434_s5 + $0x38] sm:$0xff] }
   0x7   :  { %916 = vmatprep.subr.bf16.mxu1 %v1073_v3 }
   0x8   :  { %912 = vmatpush3.bf16.msra.mxu0 %v911_v7 }
   0x9   :  { %937 = vmatprep.subr.bf16.mxu0 %v1073_v3 }
   0xa   :  { %918 = vmatpush3.bf16.msra.mxu1 %v917_v15 }
   0xb   :  { %778 = vmatmul.mubr.msk.f32.vlgmr.msra.gmra.mrb[0].mxu0 %vm51_vm1, %v39_v16 }
   0xc   :  { %939 = vmatpush3.bf16.msra.mxu0 %v938_v17  ;;  %823 = vmatprep.mubr.msk.f32.mxu0 %vm1074_vm0, %v1075_v6 }
   0xd   :  { %16 = vsyncpa [#allocation6], 0  ;;  %940 = vmatprep.subr.bf16.mxu0 %v1073_v3  ;;  %919 = vmatprep.subr.bf16.mxu1 %v1073_v3  ;;  %v659_v26 = vld [vmem:[%s1434_s5 + $0x80] sm:$0xff]  ;;  %v660_v27 = vld [vmem:[%s1434_s5 + $0x88] sm:$0xff]  ;;  %v923_v28 = vpack.c.bf16 %v134_v25, %v133_v24  ;;  %vm35_vm2 = vcmask 130048   ;;  %s1077_s29 = smov [#allocation3]  }
   0xe   :  { %921 = vmatpush3.bf16.msra.mxu1 %v920_v22  ;;  %v216_v29 = vld [vmem:[%s1430_s1] sm:$0xff]  ;;  %v944_v30 = vpack.c.bf16 %v660_v27, %v659_v26  ;;  %v136_v32 = vld [vmem:[%s1434_s5 + $0x48] sm:$0xff]  ;;  %v661_v33 = vld [vmem:[%s1434_s5 + $0x90] sm:$0xff]  ;;  %36 = vst.msk [vmem:[#allocation2] sm:$0xff] %vm35_vm2, %v1075_v6  ;;  %s615_s30 = sshll.u32 %s1077_s29, 4  ;;  %s616_s30 = int_to_ptr.vmem [resolvable:$true] %s615_s30 }
   0xf   :  { %922 = vmatprep.subr.bf16.mxu1 %v1073_v3  ;;  %v135_v31 = vld [vmem:[%s1434_s5 + $0x40] sm:$0xff]  ;;  %v662_v34 = vld [vmem:[%s1434_s5 + $0x98] sm:$0xff]  ;;  %v137_v37 = vld [vmem:[%s1434_s5 + $0x50] sm:$0xff]  ;;  %37 = vst.msk [vmem:[#allocation2 + $0x8] sm:$0xff] %vm35_vm2, %v1075_v6 }
  0x10   :  { %942 = vmatpush3.bf16.msra.mxu0 %v941_v23  ;;  %v926_v35 = vpack.c.bf16 %v136_v32, %v135_v31  ;;  %v947_v36 = vpack.c.bf16 %v662_v34, %v661_v33  ;;  %v138_v38 = vld [vmem:[%s1434_s5 + $0x58] sm:$0xff]  ;;  %v663_v39 = vld [vmem:[%s1434_s5 + $0xa0] sm:$0xff]  ;;  %v664_v40 = vld [vmem:[%s1434_s5 + $0xa8] sm:$0xff]  ;;  %38 = vst.msk [vmem:[#allocation2 + $0x10] sm:$0xff] %vm35_vm2, %v1075_v6 }
  0x11   :  { %943 = vmatprep.subr.bf16.mxu0 %v1073_v3  ;;  %v929_v41 = vpack.c.bf16 %v138_v38, %v137_v37  ;;  %v950_v42 = vpack.c.bf16 %v664_v40, %v663_v39  ;;  %v139_v43 = vld [vmem:[%s1434_s5 + $0x60] sm:$0xff]  ;;  %v140_v44 = vld [vmem:[%s1434_s5 + $0x68] sm:$0xff]  ;;  %v665_v45 = vld [vmem:[%s1434_s5 + $0xb0] sm:$0xff] }
  0x12   :  { %924 = vmatpush3.bf16.msra.mxu1 %v923_v28  ;;  %v666_v46 = vld [vmem:[%s1434_s5 + $0xb8] sm:$0xff]  ;;  %v932_v47 = vpack.c.bf16 %v140_v44, %v139_v43  ;;  %v667_v49 = vld [vmem:[%s1434_s5 + $0xc0] sm:$0xff]  ;;  %v668_v50 = vld [vmem:[%s1434_s5 + $0xc8] sm:$0xff] }
  0x13   :  { %824 = vmatmul.mubr.msk.f32.vlgmr.msra.gmra.mrb[2].mxu0 %vm51_vm1, %v216_v29  ;;  %925 = vmatprep.subr.bf16.mxu1 %v1073_v3  ;;  %v953_v48 = vpack.c.bf16 %v666_v46, %v665_v45  ;;  %v956_v51 = vpack.c.bf16 %v668_v50, %v667_v49  ;;  %v669_v52 = vld [vmem:[%s1434_s5 + $0xd0] sm:$0xff]  ;;  %v670_v53 = vld [vmem:[%s1434_s5 + $0xd8] sm:$0xff]  ;;  %v671_v58 = vld [vmem:[%s1434_s5 + $0xe0] sm:$0xff] }
  0x14   :  { %945 = vmatpush3.bf16.msra.mxu0 %v944_v30  ;;  %858 = vmatprep.mubr.msk.f32.mxu0 %vm1074_vm0, %v1075_v6  ;;  %v959_v54 = vpack.c.bf16 %v670_v53, %v669_v52  ;;  %v141_v55 = vld [vmem:[%s1434_s5 + $0x70] sm:$0xff]  ;;  %v142_v56 = vld [vmem:[%s1434_s5 + $0x78] sm:$0xff]  ;;  %v672_v59 = vld [vmem:[%s1434_s5 + $0xe8] sm:$0xff] }
  0x15   :  { %946 = vmatprep.subr.bf16.mxu0 %v1073_v3  ;;  %v935_v57 = vpack.c.bf16 %v142_v56, %v141_v55  ;;  %v962_v60 = vpack.c.bf16 %v672_v59, %v671_v58  ;;  %v673_v61 = vld [vmem:[%s1434_s5 + $0xf0] sm:$0xff]  ;;  %v674_v62 = vld [vmem:[%s1434_s5 + $0xf8] sm:$0xff]  ;;  %v650_v0 = vld [vmem:[%s1433_s4] ss:$0 sm:$0xff] }
  0x16   :  { %927 = vmatpush3.bf16.msra.mxu1 %v926_v35  ;;  %v965_v63 = vpack.c.bf16 %v674_v62, %v673_v61  ;;  %v682_v1 = vld [vmem:[%s1434_s5 + $0x100] sm:$0xff]  ;;  %v683_v2 = vld [vmem:[%s1434_s5 + $0x108] sm:$0xff]  ;;  %v684_v10 = vld [vmem:[%s1434_s5 + $0x110] sm:$0xff] }
  0x17   :  { %928 = vmatprep.subr.bf16.mxu1 %v1073_v3  ;;  %v974_v8 = vpack.c.bf16 %v683_v2, %v682_v1  ;;  %v685_v11 = vld [vmem:[%s1434_s5 + $0x118] sm:$0xff]  ;;  %v657_v12 = vld [vmem:[%s1433_s4 + $0x1] ss:$0 sm:$0xff]  ;;  %v676_v15 = vld [vmem:[%s1432_s3 + $0x48] sm:$0xff] }
  0x18   :  { %948 = vmatpush3.bf16.msra.mxu0 %v947_v36  ;;  %v977_v13 = vpack.c.bf16 %v685_v11, %v684_v10  ;;  %v675_v14 = vld [vmem:[%s1432_s3 + $0x40] sm:$0xff]  ;;  %v687_v18 = vld [vmem:[%s1434_s5 + $0x128] sm:$0xff]  ;;  %v677_v23 = vld [vmem:[%s1432_s3 + $0x50] sm:$0xff] }
  0x19   :  { %949 = vmatprep.subr.bf16.mxu0 %v1073_v3  ;;  %v686_v17 = vld [vmem:[%s1434_s5 + $0x120] sm:$0xff]  ;;  %v968_v21 = vpack.c.bf16 %v676_v15, %v675_v14  ;;  %v678_v24 = vld [vmem:[%s1432_s3 + $0x58] sm:$0xff]  ;;  %v688_v28 = vld [vmem:[%s1434_s5 + $0x130] sm:$0xff]  ;;  %s1076_s3 = smov [#allocation5]  }
  0x1a   :  { %930 = vmatpush3.bf16.msra.mxu1 %v929_v41  ;;  %v980_v25 = vpack.c.bf16 %v687_v18, %v686_v17  ;;  %v971_v26 = vpack.c.bf16 %v678_v24, %v677_v23  ;;  %v395_v27 = vld [vmem:[%s1431_s2] sm:$0xff]  ;;  %v691_v31 = vld [vmem:[%s1434_s5 + $0x148] sm:$0xff]  ;;  %v692_v33 = vld [vmem:[%s1434_s5 + $0x150] sm:$0xff]  ;;  %s625_s28 = sshll.u32 %s1076_s3, 4  ;;  %s626_s28 = int_to_ptr.vmem [resolvable:$true] %s625_s28 }
  0x1b   :  { %931 = vmatprep.subr.bf16.mxu1 %v1073_v3  ;;  %v690_v30 = vld [vmem:[%s1434_s5 + $0x140] sm:$0xff]  ;;  %v693_v34 = vld [vmem:[%s1434_s5 + $0x158] sm:$0xff]  ;;  %v695_v37 = vld [vmem:[%s1434_s5 + $0x168] sm:$0xff]  ;;  %p1008_p1 = scmp.lt.s32.totalorder %s626_s28, %s626_s28 }
  0x1c   :  { %951 = vmatpush3.bf16.msra.mxu0 %v950_v42  ;;  %v986_v32 = vpack.c.bf16 %v691_v31, %v690_v30  ;;  %v989_v35 = vpack.c.bf16 %v693_v34, %v692_v33  ;;  %v694_v36 = vld [vmem:[%s1434_s5 + $0x160] sm:$0xff]  ;;  %v696_v39 = vld [vmem:[%s1434_s5 + $0x170] sm:$0xff]  ;;  %v697_v40 = vld [vmem:[%s1434_s5 + $0x178] sm:$0xff] }
  0x1d   :  { %952 = vmatprep.subr.bf16.mxu0 %v1073_v3  ;;  %v992_v38 = vpack.c.bf16 %v695_v37, %v694_v36  ;;  %v995_v41 = vpack.c.bf16 %v697_v40, %v696_v39  ;;  %v126_v42 = vld [vmem:[#allocation2] sm:$0xff]  ;;  %v305_v46 = vld [vmem:[#allocation2 + $0x8] sm:$0xff] }
  0x1e   :  { %933 = vmatpush3.bf16.msra.mxu1 %v932_v47  ;;  %v680_v52 = vld [vmem:[%s1433_s4 + $0x2] ss:$0 sm:$0xff]  ;;  %s1003_s4 = scalar_lea.vmem %s626_s28, 128 }
  0x1f   :  { %934 = vmatprep.subr.bf16.mxu1 %v1073_v3  ;;  %p1004_p0 = scmp.ne.s32.totalorder %s626_s28, %s1003_s4  ;;  %p1009_p2 = scmp.lt.s32.totalorder %s1003_s4, %s1003_s4 }
  0x20   :  { %954 = vmatpush3.bf16.msra.mxu0 %v953_v48 }
  0x21   :  { %955 = vmatprep.subr.bf16.mxu0 %v1073_v3  ;;  %p1010_p3 = por %p1009_p2, %p1008_p1 }
  0x22   :  { %936 = vmatpush3.bf16.msra.mxu1 %v935_v57 }
  0x23   :  { %973 = vmatprep.subr.bf16.mxu1 %v1073_v3  ;;  %p1011_p4 = pnand %p1010_p3, %p1004_p0 }
  0x24   :  { %957 = vmatpush3.bf16.msra.mxu0 %v956_v51 }
  0x25   :  { %958 = vmatprep.subr.bf16.mxu0 %v1073_v3 }
  0x28   :  { %960 = vmatpush3.bf16.msra.mxu0 %v959_v54  ;;  %v700_v54 = vld [vmem:[%s1435_s6 + $0x1] ss:$0 sm:$0xff] }
  0x29   :  { %961 = vmatprep.subr.bf16.mxu0 %v1073_v3 }
  0x2c   :  { %963 = vmatpush3.bf16.msra.mxu0 %v962_v60 }
  0x2d   :  { %964 = vmatprep.subr.bf16.mxu0 %v1073_v3 }
  0x30   :  { %966 = vmatpush3.bf16.msra.mxu0 %v965_v63 }
  0x31   :  { %967 = vmatprep.subr.bf16.mxu0 %v1073_v3 }
  0xde   :  { %v121_v4 = vpop.f32.mrb[0].mxu0 }
  0xdf   :  { %v122_v5 = vadd.f32 %v650_v0, %v121_v4  ;;  %v779_v7 = vpop.f32.mrb[1].mxu0 }
  0xe1   :  { %v125_v9 = vmax.f32 %v122_v5, 0.0 }
  0xe3   :  { %813 = vmatmul.mubr.f32.vlgmr.msra.gmra.mrb[0].mxu1 %v125_v9 }
  0xe4   :  { %975 = vmatpush3.bf16.msra.mxu1 %v974_v8  ;;  %904 = vmatprep.mubr.msk.f32.mxu1 %vm1074_vm0, %v1075_v6 }
  0xe5   :  { %976 = vmatprep.subr.bf16.mxu1 %v1073_v3 }
  0xe6   :  { %v299_v16 = vpop.f32.mrb[2].mxu0 }
  0xe7   :  { %v300_v19 = vadd.f32 %v657_v12, %v299_v16  ;;  %v825_v20 = vpop.f32.mrb[3].mxu0 }
  0xe8   :  { %978 = vmatpush3.bf16.msra.mxu1 %v977_v13 }
  0xe9   :  { %v303_v22 = vmax.f32 %v300_v19, 0.0  ;;  %979 = vmatprep.subr.bf16.mxu1 %v1073_v3 }
  0xeb   :  { %859 = vmatmul.mubr.f32.vlgmr.msra.gmra.mrb[4].mxu0 %v303_v22 }
  0xec   :  { %969 = vmatpush3.bf16.msra.mxu0 %v968_v21  ;;  %869 = vmatprep.mubr.msk.f32.mxu0 %vm1074_vm0, %v1075_v6  ;;  %v689_v6 = vld [vmem:[%s1434_s5 + $0x138] sm:$0xff] }
  0xed   :  { %970 = vmatprep.subr.bf16.mxu0 %v1073_v3  ;;  %981 = vmatpush3.bf16.msra.mxu1 %v980_v25  ;;  %v983_v29 = vpack.c.bf16 %v689_v6, %v688_v28 }
  0xee   :  { %982 = vmatprep.subr.bf16.mxu1 %v1073_v3 }
  0xf0   :  { %972 = vmatpush3.bf16.msra.mxu0 %v971_v26 }
  0xf1   :  { %984 = vmatpush3.bf16.msra.mxu1 %v983_v29 }
  0xf2   :  { %985 = vmatprep.subr.bf16.mxu1 %v1073_v3 }
  0xf3   :  { %870 = vmatmul.mubr.msk.f32.vlgmr.msra.gmra.mrb[6].mxu0 %vm51_vm1, %v395_v27 }
  0xf5   :  { %987 = vmatpush3.bf16.msra.mxu1 %v986_v32 }
  0xf6   :  { %988 = vmatprep.subr.bf16.mxu1 %v1073_v3 }
  0xf9   :  { %990 = vmatpush3.bf16.msra.mxu1 %v989_v35 }
  0xfa   :  { %991 = vmatprep.subr.bf16.mxu1 %v1073_v3 }
  0xfd   :  { %993 = vmatpush3.bf16.msra.mxu1 %v992_v38 }
  0xfe   :  { %994 = vmatprep.subr.bf16.mxu1 %v1073_v3  ;;  %v698_v3 = vld [vmem:[%s1435_s6] ss:$0 sm:$0xff] }
 0x101   :  { %996 = vmatpush3.bf16.msra.mxu1 %v995_v41 }
 0x1b6   :  { %v209_v43 = vpop.f32.mrb[0].mxu1 }
 0x1b7   :  { %v213_v44 = vadd.f32 %v209_v43, %v126_v42  ;;  %v814_v45 = vpop.f32.mrb[1].mxu1 }
 0x1b9   :  { %215 = vst.msk [vmem:[#allocation2] sm:$0xff] %vm35_vm2, %v213_v44 }
 0x1be   :  { %v389_v47 = vpop.f32.mrb[4].mxu0 }
 0x1bf   :  { %v393_v48 = vadd.f32 %v389_v47, %v305_v46  ;;  %v860_v49 = vpop.f32.mrb[5].mxu0 }
 0x1c0   :  { %v577_v50 = vld [vmem:[#allocation2] sm:$0xff] }
 0x1c1   :  { %394 = vst.msk [vmem:[#allocation2 + $0x8] sm:$0xff] %vm35_vm2, %v393_v48  ;;  %v585_v51 = vadd.f32 %v698_v3, %v577_v50 }
 0x1c3   :  { %586 = vst.msk [vmem:[#allocation3] sm:$0xff] %vm35_vm2, %v585_v51 }
 0x1c6   :  { %v478_v53 = vpop.f32.mrb[6].mxu0 }
 0x1c7   :  { %v479_v55 = vadd.f32 %v680_v52, %v478_v53  ;;  %v871_v56 = vpop.f32.mrb[7].mxu0 }
 0x1c8   :  { %v587_v57 = vld [vmem:[#allocation2 + $0x8] sm:$0xff] }
 0x1c9   :  { %v482_v58 = vmax.f32 %v479_v55, 0.0  ;;  %v596_v59 = vadd.f32 %v700_v54, %v587_v57 }
 0x1cb   :  { %905 = vmatmul.mubr.f32.vlgmr.msra.gmra.mrb[2].mxu1 %v482_v58  ;;  %597 = vst.msk [vmem:[#allocation5] sm:$0xff] %vm35_vm2, %v596_v59 }
 0x1cc   :  { %1014 = shalt.err (!%p1011_p4)
}
 0x1cd   :  { %s1015_s12 = scalar_lea.hbm %s1437_s8, 128 }
 0x1ce   :  { %p1016_p5 = scmp.ne.s32.totalorder %s1437_s8, %s1015_s12  ;;  %p1019_p6 = scmp.lt.u32.totalorder %s1015_s12, %s1437_s8 }
 0x1d0   :  { %p1021_p7 = pnand %p1019_p6, %p1016_p5 }
 0x1d2   :  { %1024 = shalt.err (!%p1021_p7)
}
 0x1d3   :  { %628 = dma.vmem_to_hbm [thread:$0]  %s626_s28, 128, %s1437_s8, [#allocation6]  }
 0x1d4   :  { %s1025_s0 = scalar_lea.vmem %s616_s30, 128  ;;  %p1030_p9 = scmp.lt.s32.totalorder %s616_s30, %s616_s30 }
 0x1d5   :  { %p1026_p8 = scmp.ne.s32.totalorder %s616_s30, %s1025_s0  ;;  %p1031_p10 = scmp.lt.s32.totalorder %s1025_s0, %s1025_s0 }
 0x1d7   :  { %p1032_p11 = por %p1031_p10, %p1030_p9 }
 0x1d9   :  { %p1033_p12 = pnand %p1032_p11, %p1026_p8 }
 0x1db   :  { %1036 = shalt.err (!%p1033_p12)
}
 0x1dc   :  { %s1037_s19 = scalar_lea.hbm %s1436_s7, 128 }
 0x1dd   :  { %p1038_p13 = scmp.ne.s32.totalorder %s1436_s7, %s1037_s19  ;;  %p1041_p0 = scmp.lt.u32.totalorder %s1037_s19, %s1436_s7 }
 0x1df   :  { %p1043_p1 = pnand %p1041_p0, %p1038_p13 }
 0x1e1   :  { %1046 = shalt.err (!%p1043_p1)
}
 0x1e2   :  { %618 = dma.vmem_to_hbm [thread:$0]  %s616_s30, 128, %s1436_s7, [#allocation4]   ;;  %v484_v60 = vld [vmem:[#allocation2 + $0x10] sm:$0xff]  ;;  %v702_v0 = vld [vmem:[%s1435_s6 + $0x2] ss:$0 sm:$0xff] }
 0x1e3   :  { %s1078_s26 = smov [#allocation7]  }
 0x1e4   :  { %s635_s27 = sshll.u32 %s1078_s26, 4  ;;  %s636_s27 = int_to_ptr.vmem [resolvable:$true] %s635_s27 }
 0x1e5   :  { %s1047_s3 = scalar_lea.vmem %s636_s27, 128  ;;  %p1052_p3 = scmp.lt.s32.totalorder %s636_s27, %s636_s27 }
 0x1e6   :  { %p1048_p2 = scmp.ne.s32.totalorder %s636_s27, %s1047_s3  ;;  %p1053_p4 = scmp.lt.s32.totalorder %s1047_s3, %s1047_s3 }
 0x1e8   :  { %p1054_p5 = por %p1053_p4, %p1052_p3 }
 0x1ea   :  { %p1055_p6 = pnand %p1054_p5, %p1048_p2 }
 0x29e   :  { %v568_v61 = vpop.f32.mrb[2].mxu1 }
 0x29f   :  { %v572_v62 = vadd.f32 %v568_v61, %v484_v60  ;;  %v906_v63 = vpop.f32.mrb[3].mxu1 }
 0x2a1   :  { %573 = vst.msk [vmem:[#allocation2 + $0x10] sm:$0xff] %vm35_vm2, %v572_v62 }
 0x2a8   :  { %v598_v1 = vld [vmem:[#allocation2 + $0x10] sm:$0xff] }
 0x2a9   :  { %v607_v2 = vadd.f32 %v702_v0, %v598_v1 }
 0x2ab   :  { %608 = vst.msk [vmem:[#allocation7] sm:$0xff] %vm35_vm2, %v607_v2 }
 0x2ac   :  { %1058 = shalt.err (!%p1055_p6)
}
 0x2ad   :  { %s1059_s29 = scalar_lea.hbm %s1438_s9, 128 }
 0x2ae   :  { %p1060_p7 = scmp.ne.s32.totalorder %s1438_s9, %s1059_s29  ;;  %p1063_p8 = scmp.lt.u32.totalorder %s1059_s29, %s1438_s9 }
 0x2b0   :  { %p1065_p9 = pnand %p1063_p8, %p1060_p7 }
 0x2b2   :  { %1068 = shalt.err (!%p1065_p9)
}
 0x2b3   :  { %638 = dma.vmem_to_hbm [thread:$0]  %s636_s27, 128, %s1438_s9, [#allocation6]  }
 0x2b4   :  { %1069 = dma.done.wait [#allocation4], 128  }
 0x2b5   :  { %1070 = vsyncadd [#allocation4], 4294967168 }
 0x2b6   :  { %1071 = dma.done.wait [#allocation6], 256  }
 0x2b7   :  { %1072 = vsyncadd [#allocation6], 4294967040 }
 0x2b8   :  { %648 = vsyncpa [#allocation4], 1 }
 0x2b9   :  { %649 = vsyncpa [#allocation6], 1 }

</bundles_post_ra>
